<compile_context>
chip_gen: v7x
topology: tpu7x:2x2x1
jax: 0.10.0
libtpu: 0.0.40
codegen_flags: <defaults>
</compile_context>

<pallas_src>
import jax
import jax.numpy as jnp
from jax.experimental import pallas as pl
from jax.experimental.pallas import tpu as pltpu


# ----------------------------- Pallas kernel -----------------------------

def _primary_caps_kernel(p_ref, w_ref, b_ref, o_ref):
    """Fused conv-matmul + bias + Squash for one (batch, capsule-group) tile.

    p_ref: (1, S, Kpad)    bf16 im2col patches of batch b     (S = OH*OW)
    w_ref: (1, Kpad, caps) bf16 weights of capsule group g
    b_ref: (1, 1, caps)    f32  bias of capsule group g
    o_ref: (1, 1, S, caps) f32  squashed capsule vectors for (b, g)
    """
    p = p_ref[0]                                   # (S, Kpad)  bf16
    w = w_ref[0]                                   # (Kpad, caps) bf16

    # MXU matmul with f32 accumulation, bias add in f32.
    acc = jnp.dot(p, w, preferred_element_type=jnp.float32)   # (S, caps) f32
    acc = acc + b_ref[0]                                       # (1, caps) broadcast

    # Squash over the capsule (lane) axis, f32 epilogue.
    # scale = ||v||^2 / (1 + ||v||^2) / (||v|| + 1e-9)
    sq = jnp.sum(acc * acc, axis=-1, keepdims=True)             # (S, 1)
    norm = jnp.sqrt(sq)
    scale = sq * pl.reciprocal((1.0 + sq) * (norm + 1e-9), approx=True)
    out = scale * acc                                           # (S, caps)

    o_ref[...] = out[None, None].astype(o_ref.dtype)            # (1, 1, S, caps)


# ----------------------------- module forward -----------------------------

def primary_capsules(x, weight, bias, caps_channels, kernel_size=9, stride=2):
    """x: (B, Cin, H, W) NCHW. weight: (Cout, Cin, K, K). bias: (Cout,).
    Returns (B, N, caps_channels) with N = (Cout//caps_channels)*OH*OW,
    matching conv -> view(B, caps, -1) -> transpose(1, 2) -> squash."""
    B, Cin, H, W = x.shape
    Cout = weight.shape[0]
    K = kernel_size
    OH = (H - K) // stride + 1
    OW = (W - K) // stride + 1
    S = OH * OW
    assert Cout % caps_channels == 0, "out_channels must be divisible by caps_channels"
    groups = Cout // caps_channels
    Kdim = Cin * K * K
    Kpad = ((Kdim + 127) // 128) * 128            # 324 -> 384 (lane aligned)

    # --- im2col via strided slices (pure data-movement glue, no compute) ---
    # TODO(synk): at real CapsNet sizes keep x in HBM (memory_space=pl.ANY) and
    # gather the KxK rows per output tile inside the kernel with manual DMA.
    x_nhwc = jnp.transpose(x, (0, 2, 3, 1))        # (B, H, W, Cin)
    h_span = stride * (OH - 1) + 1
    w_span = stride * (OW - 1) + 1
    cols = [
        x_nhwc[:, kh:kh + h_span:stride, kw:kw + w_span:stride, :]   # (B, OH, OW, Cin)
        for kh in range(K) for kw in range(K)
    ]
    patches = jnp.stack(cols, axis=3).reshape(B, S, Kdim)   # feature = (kh,kw,cin)
    patches = jnp.pad(patches, ((0, 0), (0, 0), (0, Kpad - Kdim)))

    # --- weights: (kh, kw, cin) feature order to match patches, pad, regroup ---
    w_flat = jnp.transpose(weight, (2, 3, 1, 0)).reshape(Kdim, Cout)
    w_flat = jnp.pad(w_flat, ((0, Kpad - Kdim), (0, 0)))
    # conv channel c = capsule_i * groups + g  ->  (groups, Kpad, caps)
    w_grp = w_flat.reshape(Kpad, caps_channels, groups).transpose(2, 0, 1)
    b_grp = bias.reshape(caps_channels, groups).T.reshape(groups, 1, caps_channels)

    # bf16 MXU operands; accumulation and squash stay f32 inside the kernel.
    patches = patches.astype(jnp.bfloat16)
    w_grp = w_grp.astype(jnp.bfloat16)
    b_grp = b_grp.astype(jnp.float32)

    out4 = pl.pallas_call(
        _primary_caps_kernel,
        out_shape=jax.ShapeDtypeStruct((B, groups, S, caps_channels), jnp.float32),
        grid=(B, groups),
        in_specs=[
            pl.BlockSpec((1, S, Kpad), lambda b, g: (b, 0, 0)),
            pl.BlockSpec((1, Kpad, caps_channels), lambda b, g: (g, 0, 0)),
            pl.BlockSpec((1, 1, caps_channels), lambda b, g: (g, 0, 0)),
        ],
        out_specs=pl.BlockSpec((1, 1, S, caps_channels), lambda b, g: (b, g, 0, 0)),
        compiler_params=pltpu.CompilerParams(
            dimension_semantics=("parallel", "parallel")),
    )(patches, w_grp, b_grp)

    # (B, groups, S, caps) -> (B, N, caps) is a pure contiguous reshape
    # (n = g*OH*OW + h*OW + w), so no XLA transpose is needed after the kernel.
    return out4.reshape(B, groups * S, caps_channels)


# ----------------------------- pure-JAX reference -----------------------------

def reference(x, weight, bias, caps_channels, stride=2):
    conv = jax.lax.conv_general_dilated(
        x, weight, window_strides=(stride, stride), padding="VALID",
        dimension_numbers=("NCHW", "OIHW", "NCHW"),
        precision=jax.lax.Precision.HIGHEST)
    conv = conv + bias[None, :, None, None]
    B = x.shape[0]
    o = conv.reshape(B, caps_channels, -1).transpose(0, 2, 1)
    sq = jnp.sum(o * o, axis=-1, keepdims=True)
    norm = jnp.sqrt(sq)
    return sq / (1.0 + sq) / (norm + 1e-9) * o


# ----------------------------- main -----------------------------

if __name__ == "__main__":
    # Module config: PrimaryCapsules(in_channels=4, out_channels=16,
    #                                caps_channels=8, kernel_size=9), stride=2.
    B, Cin, H, W = 2, 4, 16, 16
    Cout, caps_channels, K, stride = 16, 8, 9, 2

    key = jax.random.PRNGKey(0)
    kx, kw, kb = jax.random.split(key, 3)
    x = jax.random.normal(kx, (B, Cin, H, W), dtype=jnp.float32)
    weight = jax.random.normal(kw, (Cout, Cin, K, K), dtype=jnp.float32) * 0.05
    bias = jax.random.normal(kb, (Cout,), dtype=jnp.float32) * 0.05

    out = primary_capsules(x, weight, bias, caps_channels, kernel_size=K, stride=stride)
    out = jax.block_until_ready(out)

    ref = jax.block_until_ready(reference(x, weight, bias, caps_channels, stride=stride))
    assert out.shape == ref.shape, (out.shape, ref.shape)
    max_err = float(jnp.max(jnp.abs(out - ref)))
    # bf16 MXU operands + approx EUP reciprocal -> slightly looser tolerance.
    assert jnp.allclose(out, ref, rtol=2e-2, atol=2e-2), f"mismatch vs reference (max abs err {max_err})"

    print("KERNEL_OK")
</pallas_src>

<mosaic_0001>
module attributes {stable_mosaic.version = 11 : i64} {
  func.func @_primary_caps_kernel(%arg0: i32, %arg1: i32, %arg2: memref<1x16x384xbf16, #tpu.memory_space<vmem>>, %arg3: memref<1x384x8xbf16, #tpu.memory_space<vmem>>, %arg4: memref<1x1x8xf32, #tpu.memory_space<vmem>>, %arg5: memref<1x1x16x8xf32, #tpu.memory_space<vmem>>) attributes {dimension_semantics = [#tpu.dimension_semantics<parallel>, #tpu.dimension_semantics<parallel>], iteration_bounds = array<i64: 2, 2>, scalar_prefetch = 0 : i64, scratch_operands = 0 : i64, tpu.core_type = #tpu.core_type<tc>, window_params = [{transform_indices = @transform_0, window_bounds = array<i64: 1, 16, 384>}, {transform_indices = @transform_1, window_bounds = array<i64: 1, 384, 8>}, {transform_indices = @transform_2, window_bounds = array<i64: 1, 1, 8>}, {transform_indices = @transform_3, window_bounds = array<i64: 1, 1, 16, 8>}]} {
    %c0 = arith.constant 0 : index
    %c0_0 = arith.constant 0 : index
    %c0_1 = arith.constant 0 : index
    %0 = vector.load %arg2[%c0, %c0_0, %c0_1] : memref<1x16x384xbf16, #tpu.memory_space<vmem>>, vector<1x16x384xbf16>
    %1 = vector.shape_cast %0 : vector<1x16x384xbf16> to vector<16x384xbf16>
    %c0_2 = arith.constant 0 : index
    %c0_3 = arith.constant 0 : index
    %c0_4 = arith.constant 0 : index
    %2 = vector.load %arg3[%c0_2, %c0_3, %c0_4] : memref<1x384x8xbf16, #tpu.memory_space<vmem>>, vector<1x384x8xbf16>
    %3 = vector.shape_cast %2 : vector<1x384x8xbf16> to vector<384x8xbf16>
    %cst = arith.constant dense<0.000000e+00> : vector<16x8xf32>
    %4 = tpu.matmul %1, %3, %cst {dimension_numbers = #tpu.dot_dimension_numbers<[1], [0], [0], [1], [0, 0, 1, 1], [], []>} : vector<16x384xbf16>, vector<384x8xbf16>, vector<16x8xf32> -> vector<16x8xf32>
    %c0_5 = arith.constant 0 : index
    %c0_6 = arith.constant 0 : index
    %c0_7 = arith.constant 0 : index
    %5 = vector.load %arg4[%c0_5, %c0_6, %c0_7] : memref<1x1x8xf32, #tpu.memory_space<vmem>>, vector<1x1x8xf32>
    %6 = vector.shape_cast %5 : vector<1x1x8xf32> to vector<1x8xf32>
    %7 = vector.broadcast %6 : vector<1x8xf32> to vector<16x8xf32>
    %8 = arith.addf %4, %7 : vector<16x8xf32>
    %9 = arith.mulf %8, %8 : vector<16x8xf32>
    %cst_8 = arith.constant dense<0.000000e+00> : vector<16xf32>
    %10 = vector.multi_reduction <add>, %9, %cst_8 [1] : vector<16x8xf32> to vector<16xf32>
    %11 = vector.shape_cast %10 : vector<16xf32> to vector<16x1xf32>
    %12 = math.sqrt %11 : vector<16x1xf32>
    %cst_9 = arith.constant 1.000000e+00 : f32
    %13 = vector.broadcast %cst_9 : f32 to vector<16x1xf32>
    %14 = arith.addf %13, %11 : vector<16x1xf32>
    %cst_10 = arith.constant 9.99999971E-10 : f32
    %15 = vector.broadcast %cst_10 : f32 to vector<16x1xf32>
    %16 = arith.addf %12, %15 : vector<16x1xf32>
    %17 = arith.mulf %14, %16 : vector<16x1xf32>
    %18 = tpu.reciprocal %17 {approx = true} : vector<16x1xf32> -> vector<16x1xf32>
    %19 = arith.mulf %11, %18 : vector<16x1xf32>
    %20 = vector.broadcast %19 : vector<16x1xf32> to vector<16x8xf32>
    %21 = arith.mulf %20, %8 : vector<16x8xf32>
    %22 = vector.shape_cast %21 : vector<16x8xf32> to vector<1x1x16x8xf32>
    %c0_11 = arith.constant 0 : index
    %c0_12 = arith.constant 0 : index
    %c0_13 = arith.constant 0 : index
    %c0_14 = arith.constant 0 : index
    %23 = vector.load %arg5[%c0_11, %c0_12, %c0_13, %c0_14] : memref<1x1x16x8xf32, #tpu.memory_space<vmem>>, vector<1x1x16x8xf32>
    tpu.vector_store %arg5[%c0_11, %c0_12, %c0_13, %c0_14], %22 {strides = array<i32>} : memref<1x1x16x8xf32, #tpu.memory_space<vmem>>, vector<1x1x16x8xf32>,
    return
  }
  func.func @transform_0(%arg0: i32, %arg1: i32) -> (i32, i32, i32) {
    %c0_i32 = arith.constant 0 : i32
    %c0_i32_0 = arith.constant 0 : i32
    %c0_i32_1 = arith.constant 0 : i32
    return %arg0, %c0_i32, %c0_i32_0 : i32, i32, i32
  }
  func.func @transform_1(%arg0: i32, %arg1: i32) -> (i32, i32, i32) {
    %c0_i32 = arith.constant 0 : i32
    %c0_i32_0 = arith.constant 0 : i32
    %c0_i32_1 = arith.constant 0 : i32
    return %arg1, %c0_i32, %c0_i32_0 : i32, i32, i32
  }
  func.func @transform_2(%arg0: i32, %arg1: i32) -> (i32, i32, i32) {
    %c0_i32 = arith.constant 0 : i32
    %c0_i32_0 = arith.constant 0 : i32
    %c0_i32_1 = arith.constant 0 : i32
    return %arg1, %c0_i32, %c0_i32_0 : i32, i32, i32
  }
  func.func @transform_3(%arg0: i32, %arg1: i32) -> (i32, i32, i32, i32) {
    %c0_i32 = arith.constant 0 : i32
    %c0_i32_0 = arith.constant 0 : i32
    %c0_i32_1 = arith.constant 0 : i32
    return %arg0, %arg1, %c0_i32, %c0_i32_0 : i32, i32, i32, i32
  }
}

</mosaic_0001>

<bundles_post_ra>
// kernel: tpu_custom_call.1
= control target key start
LH: loop header
LB: loop body
LE: loop exit
PB: predicated region body
PF: predicated region fallthrough
CT: control target
= control target key end

     0   :  { %s906_s12 = smov 0   ;;  %s908_s13 = smov 0   ;;  %s1015_s0 = inlined_call_operand.vmem [shape: bf16[2,16,384], index: 0, kind: input, shape index: {}]   ;;  %s1016_s1 = inlined_call_operand.vmem [shape: bf16[2,384,8], index: 1, kind: input, shape index: {}]   ;;  %s1017_s2 = inlined_call_operand.vmem [shape: f32[2,1,8], index: 2, kind: input, shape index: {}]   ;;  %s1018_s3 = inlined_call_operand.vmem [shape: f32[2,2,16,8], index: 3, kind: output, shape index: {}]  }
   0x1   :  { %s910_s14 = smov 0   ;;  %s912_s15 = smov 0  }
   0x2   :  { %s914_s16 = smov 0  }
   0x3 LB: > { %s22_s17 = sadd.s32 1, %s874_s14  ;;  %s25_s18 = sadd.s32 1, %s878_s15  ;;  %s882_s16 = sphi %s914_s16, %s13_s16   ;;  %s878_s15 = sphi %s912_s15, %s1022_s15   ;;  %s874_s14 = sphi %s910_s14, %s1021_s14   ;;  %s870_s13 = sphi %s908_s13, %s1020_s13   ;;  %s866_s12 = sphi %s906_s12, %s1019_s12  }
   0x4   : > { %p23_p0 = scmp.ge.s32.totalorder %s22_s17, 2  ;;  %p677_p1 = scmp.ge.s32.totalorder %s882_s16, 1 }
   0x5   : > { %p169_p2 = scmp.lt.s32.totalorder %s882_s16, 5 }
   0x6   : > { %s1024_s17 = smov (%p23_p0, %s22_s17), 0  ;;  %s1026_s18 = smov (!%p23_p0, %s25_s18), %s878_s15 }
   0x7   : > { %p170_p3 = pnand %p677_p1, %p169_p2  ;;  %p27_p4 = scmp.ge.s32.totalorder %s1026_s18, 2 }
   0x8   : > { %p210_p5 = scmp.lt.s32.totalorder (!%p170_p3), %s866_s12, 1  ;;  %v884_v0 = vmov (!%p170_p3), 0.0   ;;  %vm885_vm0 = vmmov (!%p170_p3), 0   ;;  %p205_p6 = scmp.lt.s32.totalorder (!%p170_p3), %s870_s13, 1  ;;  %vm531_vm1 = vcmask (!%p170_p3), 64512  }
   0x9   : > { %s1028_s18 = smov (%p27_p4, %s1026_s18), 0  ;;  %173 = sbr.rel (%p170_p3) target bundleno = 456 (0x1c8), region = 32 }
   0xa   : > { %744 = vmatprep.subr.bf16.mxu1 (!%p170_p3), %v884_v0  ;;  %760 = vmatprep.mubr.msk.bf16.mxu1 (!%p170_p3), %vm885_vm0, %v884_v0 }
  0x10   : > { %s1030_s12 = smov (!%p210_p5, %s866_s12), 1  ;;  %s1032_s13 = smov (!%p205_p6, %s870_s13), 1 }
  0x11   : > { %s765_s19 = smul.u32 192, %s1030_s12  ;;  %s217_s29 = scalar_lea.vmem %s1017_s2, %s1030_s12 }
  0x12   : > { %s764_s23 = smul.u32 24, %s1032_s13  ;;  %v683_v30 = vld [vmem:[%s217_s29] ss:$0 sm:$0xff]  ;;  %s680_s30 = sshll.u32 %s1030_s12, 1 }
  0x13   : > { %s946_s22 = scalar_lea.vmem %s1016_s1, %s765_s19  ;;  %s681_s4 = sshll.u32 %s1032_s13, 2 }
  0x14   : > { %v808_v1 = vld [vmem:[%s946_s22 + $0x40] sm:$0xff]   ;;  %v811_v4 = vld [vmem:[%s946_s22 + $0x48] sm:$0xff]   ;;  %v814_v7 = vld [vmem:[%s946_s22 + $0x50] sm:$0xff]   ;;  %s209_s26 = scalar_lea.vmem %s1015_s0, %s764_s23  ;;  %s224_s5 = sadd.s32 %s681_s4, %s680_s30 }
  0x15   : > { %v809_v2 = vld [vmem:[%s946_s22] sm:$0xff]   ;;  %713 = vmatprep.subr.bf16.mxu0 %v808_v1  ;;  %v812_v5 = vld [vmem:[%s946_s22 + $0x8] sm:$0xff]   ;;  %v815_v8 = vld [vmem:[%s946_s22 + $0x10] sm:$0xff]   ;;  %s682_s6 = sshll.u32 %s224_s5, 3 }
  0x16   : > { %v810_v3 = vld [vmem:[%s946_s22 + $0x80] sm:$0xff]   ;;  %714 = vmatpush3.bf16.msra.mxu0 %v809_v2  ;;  %v813_v6 = vld [vmem:[%s946_s22 + $0x88] sm:$0xff]   ;;  %v816_v9 = vld [vmem:[%s946_s22 + $0x90] sm:$0xff]   ;;  %s226_s9 = scalar_lea.vmem %s1018_s3, %s682_s6 }
  0x17   : > { %745 = vmatpush3.bf16.msra.mxu1 %v810_v3  ;;  %715 = vmatprep.subr.bf16.mxu0 %v811_v4  ;;  %v817_v10 = vld [vmem:[%s946_s22 + $0x58] sm:$0xff]   ;;  %v820_v13 = vld [vmem:[%s946_s22 + $0x60] sm:$0xff]   ;;  %v823_v16 = vld [vmem:[%s946_s22 + $0x68] sm:$0xff]  }
  0x18   : > { %746 = vmatprep.subr.bf16.mxu1 %v884_v0  ;;  %v818_v11 = vld [vmem:[%s946_s22 + $0x18] sm:$0xff]   ;;  %v821_v14 = vld [vmem:[%s946_s22 + $0x20] sm:$0xff]   ;;  %v824_v17 = vld [vmem:[%s946_s22 + $0x28] sm:$0xff]  }
  0x19   : > { %v819_v12 = vld [vmem:[%s946_s22 + $0x98] sm:$0xff]   ;;  %v822_v15 = vld [vmem:[%s946_s22 + $0xa0] sm:$0xff]   ;;  %v825_v18 = vld [vmem:[%s946_s22 + $0xa8] sm:$0xff]  }
  0x1a   : > { %716 = vmatpush3.bf16.msra.mxu0 %v812_v5  ;;  %v826_v19 = vld [vmem:[%s946_s22 + $0x70] sm:$0xff]   ;;  %v829_v22 = vld [vmem:[%s946_s22 + $0x78] sm:$0xff]   ;;  %v831_v26 = vld [vmem:[%s209_s26] ss:$12 sps:$4 sm:$0xff]  }
  0x1b   : > { %747 = vmatpush3.bf16.msra.mxu1 %v813_v6  ;;  %717 = vmatprep.subr.bf16.mxu0 %v814_v7  ;;  %v827_v20 = vld [vmem:[%s946_s22 + $0x30] sm:$0xff]   ;;  %v830_v24 = vld [vmem:[%s946_s22 + $0x38] sm:$0xff]  }
  0x1c   : > { %748 = vmatprep.subr.bf16.mxu1 %v884_v0  ;;  %v828_v21 = vld [vmem:[%s946_s22 + $0xb0] sm:$0xff]   ;;  %v834_v25 = vld [vmem:[%s946_s22 + $0xb8] sm:$0xff]  }
  0x1d   : > { %v833_v23 = vld [vmem:[%s209_s26 + $0x4] ss:$12 sps:$4 sm:$0xff]   ;;  %v835_v27 = vld [vmem:[%s209_s26 + $0x8] ss:$12 sps:$4 sm:$0xff]  }
  0x1e   : > { %718 = vmatpush3.bf16.msra.mxu0 %v815_v8  ;;  %479 = vmatprep.mubr.bf16.mxu0 %v833_v23 }
  0x1f   : > { %749 = vmatpush3.bf16.msra.mxu1 %v816_v9  ;;  %719 = vmatprep.subr.bf16.mxu0 %v817_v10 }
  0x20   : > { %750 = vmatprep.subr.bf16.mxu1 %v884_v0 }
  0x22   : > { %720 = vmatpush3.bf16.msra.mxu0 %v818_v11 }
  0x23   : > { %751 = vmatpush3.bf16.msra.mxu1 %v819_v12  ;;  %721 = vmatprep.subr.bf16.mxu0 %v820_v13 }
  0x24   : > { %752 = vmatprep.subr.bf16.mxu1 %v884_v0 }
  0x26   : > { %722 = vmatpush3.bf16.msra.mxu0 %v821_v14 }
  0x27   : > { %753 = vmatpush3.bf16.msra.mxu1 %v822_v15  ;;  %723 = vmatprep.subr.bf16.mxu0 %v823_v16 }
  0x28   : > { %754 = vmatprep.subr.bf16.mxu1 %v884_v0 }
  0x2a   : > { %724 = vmatpush3.bf16.msra.mxu0 %v824_v17 }
  0x2b   : > { %755 = vmatpush3.bf16.msra.mxu1 %v825_v18  ;;  %725 = vmatprep.subr.bf16.mxu0 %v826_v19 }
  0x2c   : > { %756 = vmatprep.subr.bf16.mxu1 %v884_v0 }
  0x2e   : > { %726 = vmatpush3.bf16.msra.mxu0 %v827_v20 }
  0x2f   : > { %757 = vmatpush3.bf16.msra.mxu1 %v828_v21  ;;  %727 = vmatprep.subr.bf16.mxu0 %v829_v22 }
  0x30   : > { %758 = vmatprep.subr.bf16.mxu1 %v884_v0 }
  0x32   : > { %728 = vmatpush3.bf16.msra.mxu0 %v830_v24 }
  0x33   : > { %759 = vmatpush3.bf16.msra.mxu1 %v834_v25 }
  0x35   : > { %480 = vmatmul.mubr.bf16.vlgmr.msra.gmra.mrb[0].mxu0 %v831_v26 }
  0x36   : > { %761 = vmatmul.mubr.bf16.vlgmr.msra.gmra.mrb[0].mxu1 %v835_v27 }
 0x108   : > { %v729_v28 = vpop.f32.mrb[0].mxu0 }
 0x109   : > { %v730_v29 = vpop.f32.mrb[1].mxu0  ;;  %v522_v31 = vpop.f32.mrb[0].mxu1 }
 0x10a   : > { %v731_v32 = vadd.f32 %v730_v29, %v729_v28  ;;  %v732_v33 = vpop.f32.mrb[2].mxu0  ;;  %v762_v34 = vpop.f32.mrb[1].mxu1 }
 0x10b   : > { %v733_v35 = vpop.f32.mrb[3].mxu0  ;;  %v525_v36 = vpop.f32.mrb[2].mxu1 }
 0x10c   : > { %v482_v37 = vadd.f32 %v731_v32, %v683_v30  ;;  %v734_v38 = vadd.f32 %v733_v35, %v732_v33  ;;  %v763_v39 = vpop.f32.mrb[3].mxu1 }
 0x10e   : > { %v523_v40 = vadd.f32 %v522_v31, %v482_v37  ;;  %v485_v41 = vadd.f32 %v734_v38, %v683_v30 }
 0x110   : > { %v526_v42 = vadd.f32 %v525_v36, %v485_v41  ;;  %v529_v43 = vmul.f32 %v523_v40, %v523_v40 }
 0x112   : > { %v532_v44 = vsel %vm531_vm1, %v529_v43, 0.0  ;;  %v530_v45 = vmul.f32 %v526_v42, %v526_v42 }
 0x113   : > { %533 = vadd.xlane.f32.xlu0 %v532_v44 }
 0x114   : > { %v535_v46 = vsel %vm531_vm1, %v530_v45, 0.0 }
 0x117   : > { %536 = vadd.xlane.f32.xlu0 %v535_v46 }
 0x1a0   : > { %v534_v47 = vpop.xlane.xlu0 %533 }
 0x1a1   : > { %836 = vrsqrt.f32 %v534_v47  ;;  %vm540_vm2 = vcmp.eq.f32.partialorder %v534_v47, inf  ;;  %v543_v51 = vand.u32 2147483648, %v534_v47  ;;  %vm542_vm3 = vcmp.eq.f32.partialorder %v534_v47, 0.0 }
 0x1a2   : > { %v552_v55 = vadd.f32 1.0, %v534_v47 }
 0x1a4   : > { %v537_v48 = vpop.xlane.xlu0 %536 }
 0x1a5   : > { %838 = vrsqrt.f32 %v537_v48  ;;  %vm547_vm4 = vcmp.eq.f32.partialorder %v537_v48, inf  ;;  %v550_v58 = vand.u32 2147483648, %v537_v48  ;;  %vm549_vm5 = vcmp.eq.f32.partialorder %v537_v48, 0.0 }
 0x1a6   : > { %v553_v62 = vadd.f32 1.0, %v537_v48 }
 0x1ab   : > { %v837_v49 = vpop.eup %836 }
 0x1ac   : > { %v539_v50 = vmul.f32 %v837_v49, %v534_v47 }
 0x1ae   : > { %v541_v52 = vsel %vm540_vm2, %v534_v47, %v539_v50 }
 0x1af   : > { %v839_v53 = vpop.eup %838  ;;  %v544_v54 = vsel %vm542_vm3, %v543_v51, %v541_v52 }
 0x1b0   : > { %v554_v56 = vadd.f32 1e-09, %v544_v54  ;;  %v546_v57 = vmul.f32 %v839_v53, %v537_v48 }
 0x1b2   : > { %v556_v59 = vmul.f32 %v554_v56, %v552_v55  ;;  %v548_v60 = vsel %vm547_vm4, %v537_v48, %v546_v57 }
 0x1b3   : > { %v551_v61 = vsel %vm549_vm5, %v550_v58, %v548_v60 }
 0x1b4   : > { %840 = vrcp.f32 %v556_v59  ;;  %v555_v63 = vadd.f32 1e-09, %v551_v61 }
 0x1b6   : > { %v557_v0 = vmul.f32 %v555_v63, %v553_v62 }
 0x1b8   : > { %842 = vrcp.f32 %v557_v0 }
 0x1be   : > { %v841_v1 = vpop.eup %840 }
 0x1bf   : > { %v560_v2 = vmul.f32 %v841_v1, %v534_v47 }
 0x1c1   : > { %v562_v3 = vmul.f32 %v560_v2, %v523_v40 }
 0x1c2   : > { %v843_v4 = vpop.eup %842 }
 0x1c3   : > { %564 = vst.msk [vmem:[%s226_s9] sm:$0xff] %vm531_vm1, %v562_v3  ;;  %v561_v5 = vmul.f32 %v843_v4, %v537_v48 }
 0x1c5   : > { %v563_v6 = vmul.f32 %v561_v5, %v526_v42 }
 0x1c7   : > { %565 = vst.msk [vmem:[%s226_s9 + $0x8] sm:$0xff] %vm531_vm1, %v563_v6 }
 0x1c8 PF: > { %s13_s16 = sadd.s32 1, %s882_s16   ;;  %s1019_s12 = smov %s874_s14 }
 0x1c9   : > { %p10_p7 = scmp.ge.s32.totalorder %s13_s16, 6   ;;  %s1020_s13 = smov %s878_s15 }
 0x1ca   : > { %s1021_s14 = smov %s1024_s17  ;;  %s1022_s15 = smov %s1028_s18 }
 0x1cb   :  { %12 = sbr.rel (!%p10_p7) target bundleno = 3 (0x3), region = 68 }

</bundles_post_ra>
